<compile_context>
chip_gen: v7x
topology: tpu7x:2x2x1
jax: 0.10.0
libtpu: 0.0.40
codegen_flags: <defaults>
</compile_context>

<pallas_src>
import functools

import jax
import jax.numpy as jnp
import numpy as np
from jax import lax
from jax.experimental import pallas as pl
from jax.experimental.pallas import tpu as pltpu

EPS = 1e-5  # torch.nn.LayerNorm default eps


def _round_up(x, m):
    return (x + m - 1) // m * m


def _nbytes(shape, dtype):
    n = 1
    for s in shape:
        n *= int(s)
    return n * np.dtype(dtype).itemsize


def _pad2(x, rows, cols):
    return jnp.pad(x, ((0, rows - x.shape[0]), (0, cols - x.shape[1])))


def _vmem_cap_bytes():
    """Scoped-VMEM cap with headroom below physical (v7x has only 64 MiB/TC)."""
    try:
        return max(32 * 2**20,
                   int(pltpu.get_tpu_info().vmem_capacity_bytes) - 16 * 2**20)
    except Exception:
        return 48 * 2**20


def _derive_tiles(num_val, num_cst, hidden_dim, tile_n, tile_c):
    HP = _round_up(hidden_dim, 128)
    shrink = max(1, HP // 128)               # keep VMEM working set ~constant
    tn = max(256, (tile_n // shrink) // 8 * 8)
    tc = max(256, (tile_c // shrink) // 8 * 8)
    TN = min(tn, _round_up(num_val, 8))
    N_pad = _round_up(num_val, TN)
    TM = min(tc, _round_up(num_cst, 8))
    C_pad = _round_up(num_cst, TM)
    TK = TN                                   # node-reduction tile in agg
    return HP, TN, N_pad, TM, C_pad, TK


# ---------------------------------------------------------------------------
# Kernel 1: node MLP (val_enc + val_send), tiled over node rows.
# ---------------------------------------------------------------------------
def _mlp_kernel(h_ref, a_ref, w1a_ref, w2_ref, w3e_ref, w3o_ref, vec_ref,
                x_ref, me_ref, mo_ref, *, H, HP):
    f32 = jnp.float32
    bf16 = jnp.bfloat16
    # Padded weight columns are zero, so every matmul result below has exactly
    # zero padded columns; only the (x - mu) terms need masking for the stats.
    col = lax.broadcasted_iota(jnp.int32, (1, HP), 1)
    mask = (col < H).astype(f32)

    vec = vec_ref[...]                                    # f32 [8, HP]
    w1b, b1, g1, be1 = vec[0:1], vec[1:2], vec[2:3], vec[3:4]
    g2e, be2e, g2o, be2o = vec[4:5], vec[5:6], vec[6:7], vec[7:8]

    h = h_ref[...]                                        # bf16 [TN, HP]
    a = a_ref[...]                                        # f32  [TN, 1]

    # ---- val_enc: Linear(H+1 -> H, bias) == h @ W1[:H] + assign * W1[H] + b
    z = jnp.dot(h, w1a_ref[...], preferred_element_type=f32) + a * w1b + b1
    z = jnp.maximum(z, 0.0)                                           # ReLU
    z = jnp.dot(z.astype(bf16), w2_ref[...], preferred_element_type=f32)
    # LayerNorm(H): padded cols of z are exactly zero -> unmasked sum is fine.
    mu = jnp.sum(z, axis=-1, keepdims=True) * (1.0 / H)
    d = (z - mu) * mask
    var = jnp.sum(d * d, axis=-1, keepdims=True) * (1.0 / H)
    x_val = d * lax.rsqrt(var + EPS) * g1 + be1
    x_ref[...] = x_val.astype(x_ref.dtype)

    # ---- val_send: Linear(H -> 2H, no bias) split into even/odd halves,
    # LayerNorm(2H) with joint statistics over both halves.
    xb = x_val.astype(bf16)
    me = jnp.dot(xb, w3e_ref[...], preferred_element_type=f32)
    mo = jnp.dot(xb, w3o_ref[...], preferred_element_type=f32)
    mu2 = (jnp.sum(me, axis=-1, keepdims=True)
           + jnp.sum(mo, axis=-1, keepdims=True)) * (1.0 / (2 * H))
    de = (me - mu2) * mask
    do = (mo - mu2) * mask
    var2 = (jnp.sum(de * de, axis=-1, keepdims=True)
            + jnp.sum(do * do, axis=-1, keepdims=True)) * (1.0 / (2 * H))
    inv = lax.rsqrt(var2 + EPS)
    me_ref[...] = (de * inv * g2e + be2e).astype(me_ref.dtype)
    mo_ref[...] = (do * inv * g2o + be2o).astype(mo_ref.dtype)


# ---------------------------------------------------------------------------
# Kernel 2: aggregation r_cst = A_even @ m_even + A_odd @ m_odd
# grid = (C_pad/TM, N_pad/TK), node (reduction) axis last; accumulate directly
# into the resident f32 output block.
# ---------------------------------------------------------------------------
def _agg_kernel(adj_e_ref, adj_o_ref, me_ref, mo_ref, r_ref):
    @pl.when(pl.program_id(1) == 0)
    def _():
        r_ref[...] = jnp.zeros_like(r_ref)

    # int8 adjacency in HBM -> bf16 upcast in-kernel (VPU slack; halves bytes).
    adj_e = adj_e_ref[...].astype(jnp.bfloat16)
    adj_o = adj_o_ref[...].astype(jnp.bfloat16)
    r_ref[...] += (
        jnp.dot(adj_e, me_ref[...], preferred_element_type=jnp.float32)
        + jnp.dot(adj_o, mo_ref[...], preferred_element_type=jnp.float32))


# ---------------------------------------------------------------------------
# Parameters (torch.nn.Linear weights already transposed to [in, out]).
# ---------------------------------------------------------------------------
def init_params(key, hidden_dim):
    H = hidden_dim
    ks = jax.random.split(key, 5)
    scale = 1.0 / np.sqrt(H + 1)
    return {
        # val_enc Linear(H+1 -> H, bias=True): H-part + assign row
        "w1a": jax.random.normal(ks[0], (H, H), jnp.float32) * scale,
        "w1b": jax.random.normal(ks[1], (1, H), jnp.float32) * scale,
        "b1":  jax.random.normal(ks[2], (1, H), jnp.float32) * 0.01,
        # val_enc Linear(H -> H, bias=False)
        "w2":  jax.random.normal(ks[3], (H, H), jnp.float32) / np.sqrt(H),
        # val_enc LayerNorm(H)
        "g1":  jnp.ones((1, H), jnp.float32),
        "be1": jnp.zeros((1, H), jnp.float32),
        # val_send Linear(H -> 2H, bias=False)
        "w3":  jax.random.normal(ks[4], (H, 2 * H), jnp.float32) / np.sqrt(H),
        # val_send LayerNorm(2H)
        "g2":  jnp.ones((1, 2 * H), jnp.float32),
        "be2": jnp.zeros((1, 2 * H), jnp.float32),
    }


# ---------------------------------------------------------------------------
# Dense even/odd adjacency (edge multiplicities). Graph-only: build once and
# reuse across all layers / iterations.
# ---------------------------------------------------------------------------
def build_adjacency(cst_edges, LE, num_cst, num_val, hidden_dim, *,
                    tile_n=2048, tile_c=1024, dtype=jnp.int8):
    # int8 multiplicities are exact for <= 127 parallel edges per (cst, val).
    # TODO(synk): for genuinely sparse graphs replace the dense adjacency with
    # a scalar-prefetch (PrefetchScalarGridSpec) edge gather/accumulate kernel
    # (O(E*H) instead of O(C*N*H)).
    _, _, N_pad, _, C_pad, _ = _derive_tiles(num_val, num_cst, hidden_dim,
                                             tile_n, tile_c)
    in_idx = cst_edges[0]
    val_idx = cst_edges[1]
    w_even = (LE == 0).astype(dtype)
    w_odd = (LE == 1).astype(dtype)
    adj_even = jnp.zeros((C_pad, N_pad), dtype).at[in_idx, val_idx].add(w_even)
    adj_odd = jnp.zeros((C_pad, N_pad), dtype).at[in_idx, val_idx].add(w_odd)
    return adj_even, adj_odd


# ---------------------------------------------------------------------------
# Forward wrapper.
# ---------------------------------------------------------------------------
def val2cst_forward(h_val, assign, params, cst_edges, LE, num_cst,
                    aggr="sum", *, tile_n=2048, tile_c=1024,
                    x_dtype=jnp.bfloat16, adj=None):
    # TODO(synk): only 'sum' aggregation implemented ('mean' = row-normalized
    # adjacency; 'max' has no clean matmul form).
    assert aggr == "sum"
    N, H = h_val.shape
    bf16 = jnp.bfloat16
    f32 = jnp.float32

    HP, TN, N_pad, TM, C_pad, TK = _derive_tiles(N, num_cst, H, tile_n, tile_c)
    vmem_cap = _vmem_cap_bytes()

    # ---- padded / bf16 operands --------------------------------------------
    h_p = _pad2(h_val.astype(bf16), N_pad, HP)
    a_p = _pad2(assign.reshape(-1, 1).astype(f32), N_pad, 1)

    w1a = _pad2(params["w1a"].astype(bf16), HP, HP)
    w2 = _pad2(params["w2"].astype(bf16), HP, HP)
    w3e = _pad2(params["w3"][:, :H].astype(bf16), HP, HP)   # even messages
    w3o = _pad2(params["w3"][:, H:].astype(bf16), HP, HP)   # odd messages
    # Six small bias / LayerNorm vectors packed into one (8, HP) f32 block.
    vec = jnp.zeros((8, HP), f32)
    vec = vec.at[0, :H].set(params["w1b"].reshape(-1))
    vec = vec.at[1, :H].set(params["b1"].reshape(-1))
    vec = vec.at[2, :H].set(params["g1"].reshape(-1))
    vec = vec.at[3, :H].set(params["be1"].reshape(-1))
    vec = vec.at[4, :H].set(params["g2"][0, :H])
    vec = vec.at[5, :H].set(params["be2"][0, :H])
    vec = vec.at[6, :H].set(params["g2"][0, H:])
    vec = vec.at[7, :H].set(params["be2"][0, H:])

    # ---- kernel 1: node MLP --------------------------------------------------
    row = lambda i: (i, 0)
    full = lambda i: (0, 0)
    # TODO(synk): pipeline_mode=pl.Buffered(1) on the grid-invariant weight
    # specs would drop their second VMEM buffer (only matters for H >= 512).
    mlp_in_specs = [
        pl.BlockSpec((TN, HP), row),          # h (bf16)
        pl.BlockSpec((TN, 1), row),           # assign (f32)
        pl.BlockSpec((HP, HP), full),         # w1a
        pl.BlockSpec((HP, HP), full),         # w2
        pl.BlockSpec((HP, HP), full),         # w3 even half
        pl.BlockSpec((HP, HP), full),         # w3 odd half
        pl.BlockSpec((8, HP), full),          # packed bias/LN vectors
    ]
    mlp_out_specs = (
        pl.BlockSpec((TN, HP), row),          # x_val
        pl.BlockSpec((TN, HP), row),          # m_even (bf16)
        pl.BlockSpec((TN, HP), row),          # m_odd  (bf16)
    )
    mlp_block_bytes = (
        _nbytes((TN, HP), bf16) + _nbytes((TN, 1), f32)
        + 4 * _nbytes((HP, HP), bf16) + _nbytes((8, HP), f32)
        + _nbytes((TN, HP), x_dtype) + 2 * _nbytes((TN, HP), bf16))
    mlp_vmem_limit = int(min(vmem_cap, max(32 * 2**20, 3 * mlp_block_bytes)))
    mlp_cost = pl.CostEstimate(
        flops=8 * N_pad * HP * HP,
        transcendentals=2 * N_pad,
        bytes_accessed=(_nbytes((N_pad, HP), bf16) + _nbytes((N_pad, 1), f32)
                        + 4 * _nbytes((HP, HP), bf16) + _nbytes((8, HP), f32)
                        + _nbytes((N_pad, HP), x_dtype)
                        + 2 * _nbytes((N_pad, HP), bf16)))

    x_pad, me_pad, mo_pad = pl.pallas_call(
        functools.partial(_mlp_kernel, H=H, HP=HP),
        out_shape=(jax.ShapeDtypeStruct((N_pad, HP), x_dtype),
                   jax.ShapeDtypeStruct((N_pad, HP), bf16),
                   jax.ShapeDtypeStruct((N_pad, HP), bf16)),
        grid_spec=pltpu.PrefetchScalarGridSpec(
            num_scalar_prefetch=0, grid=(N_pad // TN,),
            in_specs=mlp_in_specs, out_specs=mlp_out_specs),
        compiler_params=pltpu.CompilerParams(
            dimension_semantics=("parallel",),
            vmem_limit_bytes=mlp_vmem_limit),
        cost_estimate=mlp_cost,
    )(h_p, a_p, w1a, w2, w3e, w3o, vec)

    # ---- adjacency (int8, cacheable across layers) ---------------------------
    if adj is None:
        adj = build_adjacency(cst_edges, LE, num_cst, N, H,
                              tile_n=tile_n, tile_c=tile_c)
    adj_even, adj_odd = adj
    assert adj_even.shape == (C_pad, N_pad) and adj_odd.shape == (C_pad, N_pad)
    adj_dt = adj_even.dtype

    # ---- kernel 2: tiled aggregation matmul ---------------------------------
    agg_in_specs = [
        pl.BlockSpec((TM, TK), lambda i, k: (i, k)),        # adj_even (int8)
        pl.BlockSpec((TM, TK), lambda i, k: (i, k)),        # adj_odd  (int8)
        pl.BlockSpec((TK, HP), lambda i, k: (k, 0)),        # m_even   (bf16)
        pl.BlockSpec((TK, HP), lambda i, k: (k, 0)),        # m_odd    (bf16)
    ]
    agg_out_spec = pl.BlockSpec((TM, HP), lambda i, k: (i, 0))
    agg_block_bytes = (2 * _nbytes((TM, TK), adj_dt)
                       + 2 * _nbytes((TK, HP), bf16)
                       + _nbytes((TM, HP), f32))
    agg_vmem_limit = int(min(vmem_cap, max(32 * 2**20, 3 * agg_block_bytes)))
    agg_cost = pl.CostEstimate(
        flops=4 * C_pad * N_pad * HP,
        transcendentals=0,
        bytes_accessed=(2 * _nbytes((C_pad, N_pad), adj_dt)
                        + (C_pad // TM) * 2 * _nbytes((N_pad, HP), bf16)
                        + _nbytes((C_pad, HP), f32)))

    r_pad = pl.pallas_call(
        _agg_kernel,
        out_shape=jax.ShapeDtypeStruct((C_pad, HP), f32),
        grid_spec=pltpu.PrefetchScalarGridSpec(
            num_scalar_prefetch=0, grid=(C_pad // TM, N_pad // TK),
            in_specs=agg_in_specs, out_specs=agg_out_spec),
        compiler_params=pltpu.CompilerParams(
            dimension_semantics=("parallel", "arbitrary"),
            vmem_limit_bytes=agg_vmem_limit),
        cost_estimate=agg_cost,
    )(adj_even, adj_odd, me_pad, mo_pad)

    return r_pad[:num_cst, :H], x_pad[:N, :H]


# ---------------------------------------------------------------------------
# Pure-JAX reference mirroring the kernel precision (bf16 matmuls, f32 accum).
# ---------------------------------------------------------------------------
def _reference(h_val, assign, params, cst_edges, LE, num_cst):
    bf16 = jnp.bfloat16
    f32 = jnp.float32
    h = h_val.astype(bf16)
    a = assign.reshape(-1, 1).astype(f32)
    z = (jnp.dot(h, params["w1a"].astype(bf16), preferred_element_type=f32)
         + a * params["w1b"] + params["b1"])
    z = jnp.maximum(z, 0.0)
    z = jnp.dot(z.astype(bf16), params["w2"].astype(bf16),
                preferred_element_type=f32)
    mu = z.mean(-1, keepdims=True)
    var = ((z - mu) ** 2).mean(-1, keepdims=True)
    x_val = (z - mu) * lax.rsqrt(var + EPS) * params["g1"] + params["be1"]
    m = jnp.dot(x_val.astype(bf16), params["w3"].astype(bf16),
                preferred_element_type=f32)
    mu2 = m.mean(-1, keepdims=True)
    var2 = ((m - mu2) ** 2).mean(-1, keepdims=True)
    m = (m - mu2) * lax.rsqrt(var2 + EPS) * params["g2"] + params["be2"]
    N, H = h_val.shape
    m = m.astype(bf16).astype(f32).reshape(2 * N, H)
    out_idx = 2 * cst_edges[1] + LE
    in_idx = cst_edges[0]
    r = jnp.zeros((num_cst, H), f32).at[in_idx].add(m[out_idx])
    return r, x_val


if __name__ == "__main__":
    key = jax.random.PRNGKey(0)
    k_p, k_h, k_a, k_e0, k_e1, k_le = jax.random.split(key, 6)

    hidden_dim = 32
    num_val = 8
    num_cst = 4
    num_edges = 16

    params = init_params(k_p, hidden_dim)
    h_val = jax.random.normal(k_h, (num_val, hidden_dim), jnp.float32)
    assign = jax.random.bernoulli(k_a, 0.5, (num_val,)).astype(jnp.float32)
    cst_edges = jnp.stack([
        jax.random.randint(k_e0, (num_edges,), 0, num_cst),   # row 0: cst idx
        jax.random.randint(k_e1, (num_edges,), 0, num_val),   # row 1: val idx
    ])
    LE = jax.random.randint(k_le, (num_edges,), 0, 2)

    # Adjacency is graph-only: build once (hoisted) and reuse across layers.
    adj = build_adjacency(cst_edges, LE, num_cst, num_val, hidden_dim)

    r_cst, x_val = val2cst_forward(h_val, assign, params, cst_edges, LE,
                                   num_cst, aggr="sum", adj=adj)
    jax.block_until_ready((r_cst, x_val))

    r_ref, x_ref = _reference(h_val, assign, params, cst_edges, LE, num_cst)
    np.testing.assert_allclose(np.asarray(x_val.astype(jnp.float32)),
                               np.asarray(x_ref), rtol=1e-2, atol=1e-2)
    np.testing.assert_allclose(np.asarray(r_cst), np.asarray(r_ref),
                               rtol=1e-2, atol=1e-2)
    print("KERNEL_OK")
</pallas_src>

<mosaic_0001>
module attributes {stable_mosaic.version = 11 : i64} {
  func.func @_mlp_kernel(%arg0: i32, %arg1: memref<8x128xbf16, #tpu.memory_space<vmem>>, %arg2: memref<8x1xf32, #tpu.memory_space<vmem>>, %arg3: memref<128x128xbf16, #tpu.memory_space<vmem>>, %arg4: memref<128x128xbf16, #tpu.memory_space<vmem>>, %arg5: memref<128x128xbf16, #tpu.memory_space<vmem>>, %arg6: memref<128x128xbf16, #tpu.memory_space<vmem>>, %arg7: memref<8x128xf32, #tpu.memory_space<vmem>>, %arg8: memref<8x128xbf16, #tpu.memory_space<vmem>>, %arg9: memref<8x128xbf16, #tpu.memory_space<vmem>>, %arg10: memref<8x128xbf16, #tpu.memory_space<vmem>>) attributes {dimension_semantics = [#tpu.dimension_semantics<parallel>], iteration_bounds = array<i64: 1>, scalar_prefetch = 0 : i64, scratch_operands = 0 : i64, tpu.core_type = #tpu.core_type<tc>, window_params = [{transform_indices = @transform_0, window_bounds = array<i64: 8, 128>}, {transform_indices = @transform_1, window_bounds = array<i64: 8, 1>}, {pipeline_mode = #tpu.pipeline_mode<synchronous>, transform_indices = @transform_2, window_bounds = array<i64: 128, 128>}, {pipeline_mode = #tpu.pipeline_mode<synchronous>, transform_indices = @transform_3, window_bounds = array<i64: 128, 128>}, {pipeline_mode = #tpu.pipeline_mode<synchronous>, transform_indices = @transform_4, window_bounds = array<i64: 128, 128>}, {pipeline_mode = #tpu.pipeline_mode<synchronous>, transform_indices = @transform_5, window_bounds = array<i64: 128, 128>}, {pipeline_mode = #tpu.pipeline_mode<synchronous>, transform_indices = @transform_6, window_bounds = array<i64: 8, 128>}, {transform_indices = @transform_7, window_bounds = array<i64: 8, 128>}, {transform_indices = @transform_8, window_bounds = array<i64: 8, 128>}, {transform_indices = @transform_9, window_bounds = array<i64: 8, 128>}]} {
    %0 = tpu.iota {dimensions = array<i32: 1>} : vector<1x128xi32>
    %c32_i32 = arith.constant 32 : i32
    %1 = vector.broadcast %c32_i32 : i32 to vector<1x128xi32>
    %2 = arith.cmpi slt, %0, %1 : vector<1x128xi32>
    %3 = arith.extui %2 : vector<1x128xi1> to vector<1x128xi32>
    %4 = arith.sitofp %3 : vector<1x128xi32> to vector<1x128xf32>
    %c0 = arith.constant 0 : index
    %c0_0 = arith.constant 0 : index
    %5 = vector.load %arg7[%c0, %c0_0] : memref<8x128xf32, #tpu.memory_space<vmem>>, vector<8x128xf32>
    %6 = vector.extract_strided_slice %5 {offsets = [0, 0], sizes = [1, 128], strides = [1, 1]} : vector<8x128xf32> to vector<1x128xf32>
    %7 = vector.extract_strided_slice %5 {offsets = [1, 0], sizes = [1, 128], strides = [1, 1]} : vector<8x128xf32> to vector<1x128xf32>
    %8 = vector.extract_strided_slice %5 {offsets = [2, 0], sizes = [1, 128], strides = [1, 1]} : vector<8x128xf32> to vector<1x128xf32>
    %9 = vector.extract_strided_slice %5 {offsets = [3, 0], sizes = [1, 128], strides = [1, 1]} : vector<8x128xf32> to vector<1x128xf32>
    %10 = vector.extract_strided_slice %5 {offsets = [4, 0], sizes = [1, 128], strides = [1, 1]} : vector<8x128xf32> to vector<1x128xf32>
    %11 = vector.extract_strided_slice %5 {offsets = [5, 0], sizes = [1, 128], strides = [1, 1]} : vector<8x128xf32> to vector<1x128xf32>
    %12 = vector.extract_strided_slice %5 {offsets = [6, 0], sizes = [1, 128], strides = [1, 1]} : vector<8x128xf32> to vector<1x128xf32>
    %13 = vector.extract_strided_slice %5 {offsets = [7, 0], sizes = [1, 128], strides = [1, 1]} : vector<8x128xf32> to vector<1x128xf32>
    %c0_1 = arith.constant 0 : index
    %c0_2 = arith.constant 0 : index
    %14 = vector.load %arg1[%c0_1, %c0_2] : memref<8x128xbf16, #tpu.memory_space<vmem>>, vector<8x128xbf16>
    %c0_3 = arith.constant 0 : index
    %c0_4 = arith.constant 0 : index
    %15 = vector.load %arg2[%c0_3, %c0_4] : memref<8x1xf32, #tpu.memory_space<vmem>>, vector<8x1xf32>
    %c0_5 = arith.constant 0 : index
    %c0_6 = arith.constant 0 : index
    %16 = vector.load %arg3[%c0_5, %c0_6] : memref<128x128xbf16, #tpu.memory_space<vmem>>, vector<128x128xbf16>
    %cst = arith.constant dense<0.000000e+00> : vector<8x128xf32>
    %17 = tpu.matmul %14, %16, %cst {dimension_numbers = #tpu.dot_dimension_numbers<[1], [0], [0], [1], [0, 0, 1, 1], [], []>} : vector<8x128xbf16>, vector<128x128xbf16>, vector<8x128xf32> -> vector<8x128xf32>
    %18 = vector.broadcast %15 : vector<8x1xf32> to vector<8x128xf32>
    %19 = vector.broadcast %6 : vector<1x128xf32> to vector<8x128xf32>
    %20 = arith.mulf %18, %19 : vector<8x128xf32>
    %21 = arith.addf %17, %20 : vector<8x128xf32>
    %22 = vector.broadcast %7 : vector<1x128xf32> to vector<8x128xf32>
    %23 = arith.addf %21, %22 : vector<8x128xf32>
    %cst_7 = arith.constant 0.000000e+00 : f32
    %24 = vector.broadcast %cst_7 : f32 to vector<8x128xf32>
    %25 = arith.maximumf %23, %24 : vector<8x128xf32>
    %26 = arith.truncf %25 : vector<8x128xf32> to vector<8x128xbf16>
    %c0_8 = arith.constant 0 : index
    %c0_9 = arith.constant 0 : index
    %27 = vector.load %arg4[%c0_8, %c0_9] : memref<128x128xbf16, #tpu.memory_space<vmem>>, vector<128x128xbf16>
    %cst_10 = arith.constant dense<0.000000e+00> : vector<8x128xf32>
    %28 = tpu.matmul %26, %27, %cst_10 {dimension_numbers = #tpu.dot_dimension_numbers<[1], [0], [0], [1], [0, 0, 1, 1], [], []>} : vector<8x128xbf16>, vector<128x128xbf16>, vector<8x128xf32> -> vector<8x128xf32>
    %cst_11 = arith.constant dense<0.000000e+00> : vector<8xf32>
    %29 = vector.multi_reduction <add>, %28, %cst_11 [1] : vector<8x128xf32> to vector<8xf32>
    %30 = vector.shape_cast %29 : vector<8xf32> to vector<8x1xf32>
    %cst_12 = arith.constant 3.125000e-02 : f32
    %31 = vector.broadcast %cst_12 : f32 to vector<8x1xf32>
    %32 = arith.mulf %30, %31 : vector<8x1xf32>
    %33 = vector.broadcast %32 : vector<8x1xf32> to vector<8x128xf32>
    %34 = arith.subf %28, %33 : vector<8x128xf32>
    %35 = vector.broadcast %4 : vector<1x128xf32> to vector<8x128xf32>
    %36 = arith.mulf %34, %35 : vector<8x128xf32>
    %37 = arith.mulf %36, %36 : vector<8x128xf32>
    %cst_13 = arith.constant dense<0.000000e+00> : vector<8xf32>
    %38 = vector.multi_reduction <add>, %37, %cst_13 [1] : vector<8x128xf32> to vector<8xf32>
    %39 = vector.shape_cast %38 : vector<8xf32> to vector<8x1xf32>
    %cst_14 = arith.constant 3.125000e-02 : f32
    %40 = vector.broadcast %cst_14 : f32 to vector<8x1xf32>
    %41 = arith.mulf %39, %40 : vector<8x1xf32>
    %cst_15 = arith.constant 9.99999974E-6 : f32
    %42 = vector.broadcast %cst_15 : f32 to vector<8x1xf32>
    %43 = arith.addf %41, %42 : vector<8x1xf32>
    %44 = math.rsqrt %43 : vector<8x1xf32>
    %45 = vector.broadcast %44 : vector<8x1xf32> to vector<8x128xf32>
    %46 = arith.mulf %36, %45 : vector<8x128xf32>
    %47 = vector.broadcast %8 : vector<1x128xf32> to vector<8x128xf32>
    %48 = arith.mulf %46, %47 : vector<8x128xf32>
    %49 = vector.broadcast %9 : vector<1x128xf32> to vector<8x128xf32>
    %50 = arith.addf %48, %49 : vector<8x128xf32>
    %51 = arith.truncf %50 : vector<8x128xf32> to vector<8x128xbf16>
    %c0_16 = arith.constant 0 : index
    %c0_17 = arith.constant 0 : index
    %52 = vector.load %arg8[%c0_16, %c0_17] : memref<8x128xbf16, #tpu.memory_space<vmem>>, vector<8x128xbf16>
    tpu.vector_store %arg8[%c0_16, %c0_17], %51 {strides = array<i32>} : memref<8x128xbf16, #tpu.memory_space<vmem>>, vector<8x128xbf16>,
    %53 = arith.truncf %50 : vector<8x128xf32> to vector<8x128xbf16>
    %c0_18 = arith.constant 0 : index
    %c0_19 = arith.constant 0 : index
    %54 = vector.load %arg5[%c0_18, %c0_19] : memref<128x128xbf16, #tpu.memory_space<vmem>>, vector<128x128xbf16>
    %cst_20 = arith.constant dense<0.000000e+00> : vector<8x128xf32>
    %55 = tpu.matmul %53, %54, %cst_20 {dimension_numbers = #tpu.dot_dimension_numbers<[1], [0], [0], [1], [0, 0, 1, 1], [], []>} : vector<8x128xbf16>, vector<128x128xbf16>, vector<8x128xf32> -> vector<8x128xf32>
    %c0_21 = arith.constant 0 : index
    %c0_22 = arith.constant 0 : index
    %56 = vector.load %arg6[%c0_21, %c0_22] : memref<128x128xbf16, #tpu.memory_space<vmem>>, vector<128x128xbf16>
    %cst_23 = arith.constant dense<0.000000e+00> : vector<8x128xf32>
    %57 = tpu.matmul %53, %56, %cst_23 {dimension_numbers = #tpu.dot_dimension_numbers<[1], [0], [0], [1], [0, 0, 1, 1], [], []>} : vector<8x128xbf16>, vector<128x128xbf16>, vector<8x128xf32> -> vector<8x128xf32>
    %cst_24 = arith.constant dense<0.000000e+00> : vector<8xf32>
    %58 = vector.multi_reduction <add>, %55, %cst_24 [1] : vector<8x128xf32> to vector<8xf32>
    %59 = vector.shape_cast %58 : vector<8xf32> to vector<8x1xf32>
    %cst_25 = arith.constant dense<0.000000e+00> : vector<8xf32>
    %60 = vector.multi_reduction <add>, %57, %cst_25 [1] : vector<8x128xf32> to vector<8xf32>
    %61 = vector.shape_cast %60 : vector<8xf32> to vector<8x1xf32>
    %62 = arith.addf %59, %61 : vector<8x1xf32>
    %cst_26 = arith.constant 1.562500e-02 : f32
    %63 = vector.broadcast %cst_26 : f32 to vector<8x1xf32>
    %64 = arith.mulf %62, %63 : vector<8x1xf32>
    %65 = vector.broadcast %64 : vector<8x1xf32> to vector<8x128xf32>
    %66 = arith.subf %55, %65 : vector<8x128xf32>
    %67 = vector.broadcast %4 : vector<1x128xf32> to vector<8x128xf32>
    %68 = arith.mulf %66, %67 : vector<8x128xf32>
    %69 = vector.broadcast %64 : vector<8x1xf32> to vector<8x128xf32>
    %70 = arith.subf %57, %69 : vector<8x128xf32>
    %71 = vector.broadcast %4 : vector<1x128xf32> to vector<8x128xf32>
    %72 = arith.mulf %70, %71 : vector<8x128xf32>
    %73 = arith.mulf %68, %68 : vector<8x128xf32>
    %cst_27 = arith.constant dense<0.000000e+00> : vector<8xf32>
    %74 = vector.multi_reduction <add>, %73, %cst_27 [1] : vector<8x128xf32> to vector<8xf32>
    %75 = vector.shape_cast %74 : vector<8xf32> to vector<8x1xf32>
    %76 = arith.mulf %72, %72 : vector<8x128xf32>
    %cst_28 = arith.constant dense<0.000000e+00> : vector<8xf32>
    %77 = vector.multi_reduction <add>, %76, %cst_28 [1] : vector<8x128xf32> to vector<8xf32>
    %78 = vector.shape_cast %77 : vector<8xf32> to vector<8x1xf32>
    %79 = arith.addf %75, %78 : vector<8x1xf32>
    %cst_29 = arith.constant 1.562500e-02 : f32
    %80 = vector.broadcast %cst_29 : f32 to vector<8x1xf32>
    %81 = arith.mulf %79, %80 : vector<8x1xf32>
    %cst_30 = arith.constant 9.99999974E-6 : f32
    %82 = vector.broadcast %cst_30 : f32 to vector<8x1xf32>
    %83 = arith.addf %81, %82 : vector<8x1xf32>
    %84 = math.rsqrt %83 : vector<8x1xf32>
    %85 = vector.broadcast %84 : vector<8x1xf32> to vector<8x128xf32>
    %86 = arith.mulf %68, %85 : vector<8x128xf32>
    %87 = vector.broadcast %10 : vector<1x128xf32> to vector<8x128xf32>
    %88 = arith.mulf %86, %87 : vector<8x128xf32>
    %89 = vector.broadcast %11 : vector<1x128xf32> to vector<8x128xf32>
    %90 = arith.addf %88, %89 : vector<8x128xf32>
    %91 = arith.truncf %90 : vector<8x128xf32> to vector<8x128xbf16>
    %c0_31 = arith.constant 0 : index
    %c0_32 = arith.constant 0 : index
    %92 = vector.load %arg9[%c0_31, %c0_32] : memref<8x128xbf16, #tpu.memory_space<vmem>>, vector<8x128xbf16>
    tpu.vector_store %arg9[%c0_31, %c0_32], %91 {strides = array<i32>} : memref<8x128xbf16, #tpu.memory_space<vmem>>, vector<8x128xbf16>,
    %93 = vector.broadcast %84 : vector<8x1xf32> to vector<8x128xf32>
    %94 = arith.mulf %72, %93 : vector<8x128xf32>
    %95 = vector.broadcast %12 : vector<1x128xf32> to vector<8x128xf32>
    %96 = arith.mulf %94, %95 : vector<8x128xf32>
    %97 = vector.broadcast %13 : vector<1x128xf32> to vector<8x128xf32>
    %98 = arith.addf %96, %97 : vector<8x128xf32>
    %99 = arith.truncf %98 : vector<8x128xf32> to vector<8x128xbf16>
    %c0_33 = arith.constant 0 : index
    %c0_34 = arith.constant 0 : index
    %100 = vector.load %arg10[%c0_33, %c0_34] : memref<8x128xbf16, #tpu.memory_space<vmem>>, vector<8x128xbf16>
    tpu.vector_store %arg10[%c0_33, %c0_34], %99 {strides = array<i32>} : memref<8x128xbf16, #tpu.memory_space<vmem>>, vector<8x128xbf16>,
    return
  }
  func.func @transform_0(%arg0: i32) -> (i32, i32) {
    %c0_i32 = arith.constant 0 : i32
    %c0_i32_0 = arith.constant 0 : i32
    return %arg0, %c0_i32 : i32, i32
  }
  func.func @transform_1(%arg0: i32) -> (i32, i32) {
    %c0_i32 = arith.constant 0 : i32
    %c0_i32_0 = arith.constant 0 : i32
    return %arg0, %c0_i32 : i32, i32
  }
  func.func @transform_2(%arg0: i32) -> (i32, i32) {
    %c0_i32 = arith.constant 0 : i32
    %c0_i32_0 = arith.constant 0 : i32
    %c0_i32_1 = arith.constant 0 : i32
    return %c0_i32, %c0_i32_0 : i32, i32
  }
  func.func @transform_3(%arg0: i32) -> (i32, i32) {
    %c0_i32 = arith.constant 0 : i32
    %c0_i32_0 = arith.constant 0 : i32
    %c0_i32_1 = arith.constant 0 : i32
    return %c0_i32, %c0_i32_0 : i32, i32
  }
  func.func @transform_4(%arg0: i32) -> (i32, i32) {
    %c0_i32 = arith.constant 0 : i32
    %c0_i32_0 = arith.constant 0 : i32
    %c0_i32_1 = arith.constant 0 : i32
    return %c0_i32, %c0_i32_0 : i32, i32
  }
  func.func @transform_5(%arg0: i32) -> (i32, i32) {
    %c0_i32 = arith.constant 0 : i32
    %c0_i32_0 = arith.constant 0 : i32
    %c0_i32_1 = arith.constant 0 : i32
    return %c0_i32, %c0_i32_0 : i32, i32
  }
  func.func @transform_6(%arg0: i32) -> (i32, i32) {
    %c0_i32 = arith.constant 0 : i32
    %c0_i32_0 = arith.constant 0 : i32
    %c0_i32_1 = arith.constant 0 : i32
    return %c0_i32, %c0_i32_0 : i32, i32
  }
  func.func @transform_7(%arg0: i32) -> (i32, i32) {
    %c0_i32 = arith.constant 0 : i32
    %c0_i32_0 = arith.constant 0 : i32
    return %arg0, %c0_i32 : i32, i32
  }
  func.func @transform_8(%arg0: i32) -> (i32, i32) {
    %c0_i32 = arith.constant 0 : i32
    %c0_i32_0 = arith.constant 0 : i32
    return %arg0, %c0_i32 : i32, i32
  }
  func.func @transform_9(%arg0: i32) -> (i32, i32) {
    %c0_i32 = arith.constant 0 : i32
    %c0_i32_0 = arith.constant 0 : i32
    return %arg0, %c0_i32 : i32, i32
  }
}

</mosaic_0001>

<bundles_post_ra>
// kernel: tpu_custom_call.1
= control target key start
LH: loop header
LB: loop body
LE: loop exit
PB: predicated region body
PF: predicated region fallthrough
CT: control target
= control target key end

     0   :  { %15 = vsyncpa [#allocation3], 0  ;;  %s1251_s0 = inlined_call_operand.vmem [shape: bf16[8,128], index: 0, kind: input, shape index: {}]   ;;  %s1252_s1 = inlined_call_operand.vmem [shape: f32[8,1], index: 1, kind: input, shape index: {}]   ;;  %s1253_s2 = inlined_call_operand.hbm [shape: bf16[128,128], index: 2, kind: input, shape index: {}]   ;;  %s1254_s3 = inlined_call_operand.hbm [shape: bf16[128,128], index: 3, kind: input, shape index: {}]   ;;  %s1255_s4 = inlined_call_operand.hbm [shape: bf16[128,128], index: 4, kind: input, shape index: {}]   ;;  %s1256_s5 = inlined_call_operand.hbm [shape: bf16[128,128], index: 5, kind: input, shape index: {}]   ;;  %s1257_s6 = inlined_call_operand.vmem [shape: f32[8,128], index: 6, kind: input, shape index: {}]   ;;  %s1258_s7 = inlined_call_operand.hbm [shape: bf16[8,128], index: 7, kind: output, shape index: {0}]   ;;  %s1259_s8 = inlined_call_operand.hbm [shape: bf16[8,128], index: 8, kind: output, shape index: {1}]   ;;  %s1260_s9 = inlined_call_operand.hbm [shape: bf16[8,128], index: 9, kind: output, shape index: {2}]  }
   0x1   :  { %16 = vsyncpa [#allocation6], 0 }
   0x2   :  { %17 = vsyncpa [#allocation9], 0 }
   0x3   :  { %18 = vsyncpa [#allocation4], 0 }
   0x4   :  { %19 = vsyncpa [#allocation12], 0  ;;  %s1004_s30 = smov [#allocation5]   ;;  %s1005_s11 = smov [#allocation2]  }
   0x5   :  { %s41_s10 = sshll.u32 %s1004_s30, 4  ;;  %s29_s12 = sshll.u32 %s1005_s11, 4  ;;  %s42_s10 = int_to_ptr.vmem [resolvable:$true] %s41_s10  ;;  %s1066_s12 = int_to_ptr.vmem [resolvable:$true] %s29_s12 }
   0x6   :  { %s840_s15 = scalar_lea.hbm %s1254_s3, 1024 }
   0x7   :  { %p841_p0 = scmp.ne.s32.totalorder %s1254_s3, %s840_s15  ;;  %p844_p1 = scmp.lt.u32.totalorder %s840_s15, %s1254_s3 }
   0x9   :  { %p846_p2 = pnand %p844_p1, %p841_p0 }
   0xb   :  { %849 = shalt.err (!%p846_p2)
}
   0xc   :  { %s850_s20 = scalar_lea.vmem %s42_s10, 1024  ;;  %p855_p4 = scmp.lt.s32.totalorder %s42_s10, %s42_s10 }
   0xd   :  { %p851_p3 = scmp.ne.s32.totalorder %s42_s10, %s850_s20  ;;  %p856_p5 = scmp.lt.s32.totalorder %s850_s20, %s850_s20 }
   0xf   :  { %p857_p6 = por %p856_p5, %p855_p4 }
  0x11   :  { %p858_p7 = pnand %p857_p6, %p851_p3 }
  0x13   :  { %861 = shalt.err (!%p858_p7)
}
  0x14   :  { %s1006_s21 = smov 64   ;;  %s1007_s22 = smov 4  }
  0x15   :  { %47 = dma.hbm_to_vmem [thread:$0]  %s1254_s3, 1024, %s42_s10, [#allocation6], %s1006_s21, %s1006_s21, %s1007_s22  }
  0x16   :  { %s862_s27 = scalar_lea.hbm %s1253_s2, 1024 }
  0x17   :  { %p863_p8 = scmp.ne.s32.totalorder %s1253_s2, %s862_s27  ;;  %p866_p9 = scmp.lt.u32.totalorder %s862_s27, %s1253_s2 }
  0x19   :  { %p868_p10 = pnand %p866_p9, %p863_p8 }
  0x1b   :  { %871 = shalt.err (!%p868_p10)
}
  0x1c   :  { %s872_s13 = scalar_lea.vmem %s1066_s12, 1024  ;;  %p877_p12 = scmp.lt.s32.totalorder %s1066_s12, %s1066_s12 }
  0x1d   :  { %p873_p11 = scmp.ne.s32.totalorder %s1066_s12, %s872_s13  ;;  %p878_p13 = scmp.lt.s32.totalorder %s872_s13, %s872_s13 }
  0x1f   :  { %p879_p0 = por %p878_p13, %p877_p12 }
  0x21   :  { %p880_p1 = pnand %p879_p0, %p873_p11 }
  0x23   :  { %883 = shalt.err (!%p880_p1)
}
  0x24   :  { %35 = dma.hbm_to_vmem [thread:$0]  %s1253_s2, 1024, %s1066_s12, [#allocation3], %s1006_s21, %s1006_s21, %s1007_s22  }
  0x25   :  { %s1008_s14 = smov [#allocation7]   ;;  %s1009_s16 = smov [#allocation8]  }
  0x26   :  { %s53_s15 = sshll.u32 %s1008_s14, 4  ;;  %s65_s17 = sshll.u32 %s1009_s16, 4  ;;  %s54_s15 = int_to_ptr.vmem [resolvable:$true] %s53_s15  ;;  %s1103_s17 = int_to_ptr.vmem [resolvable:$true] %s65_s17 }
  0x27   :  { %s884_s20 = scalar_lea.hbm %s1255_s4, 1024 }
  0x28   :  { %p885_p2 = scmp.ne.s32.totalorder %s1255_s4, %s884_s20  ;;  %p888_p3 = scmp.lt.u32.totalorder %s884_s20, %s1255_s4 }
  0x2a   :  { %p890_p4 = pnand %p888_p3, %p885_p2 }
  0x2c   :  { %893 = shalt.err (!%p890_p4)
}
  0x2d   :  { %s894_s2 = scalar_lea.vmem %s54_s15, 1024  ;;  %p899_p6 = scmp.lt.s32.totalorder %s54_s15, %s54_s15 }
  0x2e   :  { %p895_p5 = scmp.ne.s32.totalorder %s54_s15, %s894_s2  ;;  %p900_p7 = scmp.lt.s32.totalorder %s894_s2, %s894_s2 }
  0x30   :  { %p901_p8 = por %p900_p7, %p899_p6 }
  0x32   :  { %p902_p9 = pnand %p901_p8, %p895_p5 }
  0x34   :  { %905 = shalt.err (!%p902_p9)
}
  0x35   :  { %59 = dma.hbm_to_vmem [thread:$0]  %s1255_s4, 1024, %s54_s15, [#allocation6], %s1006_s21, %s1006_s21, %s1007_s22  }
  0x36   :  { %s906_s30 = scalar_lea.hbm %s1256_s5, 1024 }
  0x37   :  { %p907_p10 = scmp.ne.s32.totalorder %s1256_s5, %s906_s30  ;;  %p910_p11 = scmp.lt.u32.totalorder %s906_s30, %s1256_s5 }
  0x39   :  { %p912_p12 = pnand %p910_p11, %p907_p10 }
  0x3b   :  { %915 = shalt.err (!%p912_p12)
}
  0x3c   :  { %s916_s14 = scalar_lea.vmem %s1103_s17, 1024  ;;  %p921_p0 = scmp.lt.s32.totalorder %s1103_s17, %s1103_s17 }
  0x3d   :  { %p917_p13 = scmp.ne.s32.totalorder %s1103_s17, %s916_s14  ;;  %p922_p1 = scmp.lt.s32.totalorder %s916_s14, %s916_s14 }
  0x3f   :  { %p923_p2 = por %p922_p1, %p921_p0 }
  0x41   :  { %p924_p3 = pnand %p923_p2, %p917_p13 }
  0x43   :  { %927 = shalt.err (!%p924_p3)
}
  0x44   :  { %71 = dma.hbm_to_vmem [thread:$0]  %s1256_s5, 1024, %s1103_s17, [#allocation9], %s1006_s21, %s1006_s21, %s1007_s22  }
  0x45   :  { %994 = dma.done.wait [#allocation3], 1024  }
  0x46   :  { %995 = vsyncadd [#allocation3], 4294966272 }
  0x47   :  { %996 = dma.done.wait [#allocation6], 2048  }
  0x48   :  { %997 = vsyncadd [#allocation6], 4294965248 }
  0x49   :  { %998 = dma.done.wait [#allocation9], 1024  }
  0x4a   :  { %999 = vsyncadd [#allocation9], 4294966272  ;;  %v1010_v0 = vmov 0.0   ;;  %vm1011_vm0 = vmmov 0   ;;  %v1012_v1 = vmov 0   ;;  %v804_v2 = vld [vmem:[#allocation2] sm:$0xff]   ;;  %v87_v20 = vlaneseq }
  0x4b   :  { %711 = vmatprep.subr.bf16.mxu0 %v1010_v0  ;;  %727 = vmatprep.mubr.msk.bf16.mxu0 %vm1011_vm0, %v1010_v0  ;;  %v805_v3 = vld [vmem:[#allocation2 + $0x8] sm:$0xff]   ;;  %v806_v4 = vld [vmem:[#allocation2 + $0x10] sm:$0xff]   ;;  %v94_v5 = vld [vmem:[%s1252_s1] sm:$0xff] }
  0x4c   :  { %803 = vset.pattern.permute.xlu0 %v1012_v1  ;;  %731 = vmatprep.subr.bf16.mxu1 %v1010_v0  ;;  %v812_v6 = vld [vmem:[#allocation5] sm:$0xff]   ;;  %v807_v7 = vld [vmem:[#allocation2 + $0x18] sm:$0xff]   ;;  %v813_v8 = vld [vmem:[#allocation5 + $0x8] sm:$0xff]   ;;  %v1170_v21 = vshrl.u32 %v87_v20, 7  ;;  %v88_v45 = vand.u32 127, %v87_v20 }
  0x4d   :  { %747 = vmatprep.mubr.msk.bf16.mxu1 %vm1011_vm0, %v1010_v0  ;;  %712 = vmatpush3.bf16.msra.mxu0 %v804_v2  ;;  %v808_v9 = vld [vmem:[#allocation2 + $0x20] sm:$0xff]   ;;  %v814_v10 = vld [vmem:[#allocation5 + $0x10] sm:$0xff]   ;;  %v809_v11 = vld [vmem:[#allocation2 + $0x28] sm:$0xff]  }
  0x4e   :  { %713 = vmatprep.subr.bf16.mxu0 %v1010_v0  ;;  %113 = vperm.xlu0 %803, %v94_v5   ;;  %v815_v12 = vld [vmem:[#allocation5 + $0x18] sm:$0xff]   ;;  %v810_v13 = vld [vmem:[#allocation2 + $0x30] sm:$0xff]   ;;  %v816_v14 = vld [vmem:[#allocation5 + $0x20] sm:$0xff]   ;;  %v118_v22 = vsub.s32 0, %v1170_v21  ;;  %v211_v26 = vsub.s32 1, %v1170_v21  ;;  %vm89_vm1 = vcmp.lt.s32.totalorder %v88_v45, 32 }
  0x4f   :  { %732 = vmatpush3.bf16.msra.mxu1 %v812_v6  ;;  %v811_v15 = vld [vmem:[#allocation2 + $0x38] sm:$0xff]   ;;  %v817_v16 = vld [vmem:[#allocation5 + $0x28] sm:$0xff]   ;;  %v93_v17 = vld [vmem:[%s1251_s0] sm:$0xf]  ;;  %v1188_v48 = vsel %vm89_vm1, 1.0, %v1010_v0  ;;  %v339_v5 = vsub.s32 3, %v1170_v21 }
  0x50   :  { %733 = vmatprep.subr.bf16.mxu1 %v1010_v0  ;;  %v818_v18 = vld [vmem:[#allocation5 + $0x30] sm:$0xff]   ;;  %v819_v19 = vld [vmem:[#allocation5 + $0x38] sm:$0xff]   ;;  %v1176_v23 = vld [vmem:[%s1257_s6] sm:$0xff]  ;;  %s1013_s6 = smov [#allocation10]  }
  0x51   :  { %714 = vmatpush3.bf16.msra.mxu0 %v805_v3  ;;  %v119_v24 = vrot.slane %v1176_v23, %v118_v22  ;;  %v212_v28 = vrot.slane %v1176_v23, %v211_v26  ;;  %v820_v41 = vld [vmem:[#allocation7] sm:$0xff]   ;;  %v822_v43 = vld [vmem:[#allocation7 + $0x8] sm:$0xff]   ;;  %v824_v52 = vld [vmem:[#allocation7 + $0x10] sm:$0xff]   ;;  %s604_s17 = sshll.u32 %s1013_s6, 4  ;;  %s605_s17 = int_to_ptr.vmem [resolvable:$true] %s604_s17 }
  0x52   :  { %715 = vmatprep.subr.bf16.mxu0 %v1010_v0  ;;  %v821_v42 = vld [vmem:[#allocation8] sm:$0xff]   ;;  %v823_v44 = vld [vmem:[#allocation8 + $0x8] sm:$0xff]   ;;  %v825_v53 = vld [vmem:[#allocation8 + $0x10] sm:$0xff]   ;;  %s928_s18 = scalar_lea.vmem %s605_s17, 64  ;;  %p933_p5 = scmp.lt.s32.totalorder %s605_s17, %s605_s17 }
  0x53   :  { %734 = vmatpush3.bf16.msra.mxu1 %v813_v8  ;;  %v826_v54 = vld [vmem:[#allocation7 + $0x18] sm:$0xff]   ;;  %v828_v56 = vld [vmem:[#allocation7 + $0x20] sm:$0xff]   ;;  %v830_v58 = vld [vmem:[#allocation7 + $0x28] sm:$0xff]   ;;  %p929_p4 = scmp.ne.s32.totalorder %s605_s17, %s928_s18  ;;  %p934_p6 = scmp.lt.s32.totalorder %s928_s18, %s928_s18 }
  0x54   :  { %735 = vmatprep.subr.bf16.mxu1 %v1010_v0  ;;  %v827_v55 = vld [vmem:[#allocation8 + $0x18] sm:$0xff]   ;;  %v829_v57 = vld [vmem:[#allocation8 + $0x20] sm:$0xff]   ;;  %v831_v59 = vld [vmem:[#allocation8 + $0x28] sm:$0xff]  }
  0x55   :  { %716 = vmatpush3.bf16.msra.mxu0 %v806_v4  ;;  %v832_v60 = vld [vmem:[#allocation7 + $0x30] sm:$0xff]   ;;  %v834_v62 = vld [vmem:[#allocation7 + $0x38] sm:$0xff]   ;;  %v334_v4 = vsub.s32 2, %v1170_v21  ;;  %p935_p7 = por %p934_p6, %p933_p5 }
  0x56   :  { %717 = vmatprep.subr.bf16.mxu0 %v1010_v0  ;;  %v833_v61 = vld [vmem:[#allocation8 + $0x30] sm:$0xff]   ;;  %v835_v63 = vld [vmem:[#allocation8 + $0x38] sm:$0xff]  }
  0x57   :  { %736 = vmatpush3.bf16.msra.mxu1 %v814_v10  ;;  %v335_v6 = vrot.slane %v1176_v23, %v334_v4  ;;  %p936_p8 = pnand %p935_p7, %p929_p4 }
  0x58   :  { %737 = vmatprep.subr.bf16.mxu1 %v1010_v0 }
  0x59   :  { %718 = vmatpush3.bf16.msra.mxu0 %v807_v7 }
  0x5a   :  { %719 = vmatprep.subr.bf16.mxu0 %v1010_v0 }
  0x5b   :  { %738 = vmatpush3.bf16.msra.mxu1 %v815_v12 }
  0x5c   :  { %739 = vmatprep.subr.bf16.mxu1 %v1010_v0 }
  0x5d   :  { %720 = vmatpush3.bf16.msra.mxu0 %v808_v9  ;;  %v340_v9 = vrot.slane %v1176_v23, %v339_v5 }
  0x5e   :  { %721 = vmatprep.subr.bf16.mxu0 %v1010_v0 }
  0x5f   :  { %740 = vmatpush3.bf16.msra.mxu1 %v816_v14 }
  0x60   :  { %741 = vmatprep.subr.bf16.mxu1 %v1010_v0 }
  0x61   :  { %722 = vmatpush3.bf16.msra.mxu0 %v809_v11 }
  0x62   :  { %723 = vmatprep.subr.bf16.mxu0 %v1010_v0 }
  0x63   :  { %742 = vmatpush3.bf16.msra.mxu1 %v817_v16 }
  0x64   :  { %743 = vmatprep.subr.bf16.mxu1 %v1010_v0 }
  0x65   :  { %724 = vmatpush3.bf16.msra.mxu0 %v810_v13 }
  0x66   :  { %725 = vmatprep.subr.bf16.mxu0 %v1010_v0 }
  0x67   :  { %744 = vmatpush3.bf16.msra.mxu1 %v818_v18 }
  0x68   :  { %745 = vmatprep.subr.bf16.mxu1 %v1010_v0 }
  0x69   :  { %726 = vmatpush3.bf16.msra.mxu0 %v811_v15 }
  0x6a   :  { %751 = vmatprep.subr.bf16.mxu0 %v1010_v0 }
  0x6b   :  { %746 = vmatpush3.bf16.msra.mxu1 %v819_v19 }
  0x6c   :  { %728 = vmatmul.mubr.bf16.vlgmr.msra.gmra.mrb[0].mxu0 %v93_v17  ;;  %771 = vmatprep.subr.bf16.mxu1 %v1010_v0 }
  0x6d   :  { %767 = vmatprep.mubr.msk.bf16.mxu0 %vm1011_vm0, %v1010_v0  ;;  %752 = vmatpush3.bf16.msra.mxu0 %v820_v41 }
  0x6e   :  { %753 = vmatprep.subr.bf16.mxu0 %v1010_v0 }
  0x71   :  { %754 = vmatpush3.bf16.msra.mxu0 %v822_v43 }
  0x72   :  { %755 = vmatprep.subr.bf16.mxu0 %v1010_v0 }
  0x75   :  { %756 = vmatpush3.bf16.msra.mxu0 %v824_v52 }
  0x76   :  { %757 = vmatprep.subr.bf16.mxu0 %v1010_v0 }
  0x79   :  { %758 = vmatpush3.bf16.msra.mxu0 %v826_v54 }
  0x7a   :  { %759 = vmatprep.subr.bf16.mxu0 %v1010_v0 }
  0x7d   :  { %760 = vmatpush3.bf16.msra.mxu0 %v828_v56 }
  0x7e   :  { %761 = vmatprep.subr.bf16.mxu0 %v1010_v0 }
  0x81   :  { %762 = vmatpush3.bf16.msra.mxu0 %v830_v58 }
  0x82   :  { %763 = vmatprep.subr.bf16.mxu0 %v1010_v0 }
  0x85   :  { %764 = vmatpush3.bf16.msra.mxu0 %v832_v60 }
  0x86   :  { %765 = vmatprep.subr.bf16.mxu0 %v1010_v0 }
  0x89   :  { %766 = vmatpush3.bf16.msra.mxu0 %v834_v62 }
  0xcd   :  { %v114_v25 = vpop.permute.xlu0 %113 }
  0xce   :  { %v120_v27 = vmul.f32 %v119_v24, %v114_v25 }
 0x13f   :  { %v203_v29 = vpop.f32.mrb[0].mxu0 }
 0x140   :  { %v204_v30 = vadd.f32 %v203_v29, %v120_v27  ;;  %v729_v31 = vpop.f32.mrb[1].mxu0 }
 0x141   :  { %v206_v32 = vpop.f32.mrb[2].mxu0 }
 0x142   :  { %v213_v33 = vadd.f32 %v212_v28, %v204_v30  ;;  %v730_v34 = vpop.f32.mrb[3].mxu0 }
 0x144   :  { %v214_v35 = vmax.f32 %v213_v33, 0.0 }
 0x146   :  { %v215_v36 = vpack.c.bf16 %v214_v35, %v214_v35 }
 0x148   :  { %748 = vmatmul.mubr.bf16.vlgmr.msra.gmra.mrb[0].mxu1 %v215_v36 }
 0x149   :  { %787 = vmatprep.mubr.msk.bf16.mxu1 %vm1011_vm0, %v1010_v0  ;;  %772 = vmatpush3.bf16.msra.mxu1 %v821_v42 }
 0x14a   :  { %773 = vmatprep.subr.bf16.mxu1 %v1010_v0 }
 0x14d   :  { %774 = vmatpush3.bf16.msra.mxu1 %v823_v44 }
 0x14e   :  { %775 = vmatprep.subr.bf16.mxu1 %v1010_v0 }
 0x151   :  { %776 = vmatpush3.bf16.msra.mxu1 %v825_v53 }
 0x152   :  { %777 = vmatprep.subr.bf16.mxu1 %v1010_v0 }
 0x155   :  { %778 = vmatpush3.bf16.msra.mxu1 %v827_v55 }
 0x156   :  { %779 = vmatprep.subr.bf16.mxu1 %v1010_v0 }
 0x159   :  { %780 = vmatpush3.bf16.msra.mxu1 %v829_v57 }
 0x15a   :  { %781 = vmatprep.subr.bf16.mxu1 %v1010_v0 }
 0x15d   :  { %782 = vmatpush3.bf16.msra.mxu1 %v831_v59 }
 0x15e   :  { %783 = vmatprep.subr.bf16.mxu1 %v1010_v0 }
 0x161   :  { %784 = vmatpush3.bf16.msra.mxu1 %v833_v61 }
 0x162   :  { %785 = vmatprep.subr.bf16.mxu1 %v1010_v0 }
 0x165   :  { %786 = vmatpush3.bf16.msra.mxu1 %v835_v63 }
 0x21b   :  { %v314_v37 = vpop.f32.mrb[0].mxu1 }
 0x21c   :  { %320 = vadd.xlane.f32.xlu0 %v314_v37  ;;  %v749_v38 = vpop.f32.mrb[1].mxu1 }
 0x21d   :  { %v317_v39 = vpop.f32.mrb[2].mxu1 }
 0x21e   :  { %v750_v40 = vpop.f32.mrb[3].mxu1 }
 0x2a9   :  { %v321_v46 = vpop.xlane.xlu0 %320 }
 0x2aa   :  { %v322_v47 = vmul.f32 0.03125, %v321_v46 }
 0x2ac   :  { %v323_v49 = vsub.f32 %v314_v37, %v322_v47 }
 0x2ae   :  { %v324_v50 = vmul.f32 %v1188_v48, %v323_v49 }
 0x2b0   :  { %v325_v51 = vmul.f32 %v324_v50, %v324_v50 }
 0x2b2   :  { %326 = vadd.xlane.f32.xlu1 %v325_v51 }
 0x33f   :  { %v327_v1 = vpop.xlane.xlu1 %326 }
 0x340   :  { %v328_v2 = vmul.f32 0.03125, %v327_v1 }
 0x342   :  { %v329_v3 = vadd.f32 1e-05, %v328_v2 }
 0x344   :  { %836 = vrsqrt.f32 %v329_v3 }
 0x34e   :  { %v837_v7 = vpop.eup %836 }
 0x34f   :  { %v331_v8 = vmul.f32 %v837_v7, %v324_v50 }
 0x351   :  { %v336_v10 = vmul.f32 %v335_v6, %v331_v8 }
 0x353   :  { %v341_v11 = vadd.f32 %v340_v9, %v336_v10 }
 0x355   :  { %v342_v12 = vpack.c.bf16 %v341_v11, %v341_v11 }
 0x357   :  { %768 = vmatmul.mubr.bf16.vlgmr.msra.gmra.mrb[4].mxu0 %v342_v12  ;;  %343 = vst [vmem:[#allocation10] sm:$0xf] %v342_v12  ;;  %788 = vmatmul.mubr.bf16.vlgmr.msra.gmra.mrb[4].mxu1 %v342_v12 }
 0x42a   :  { %v442_v0 = vpop.f32.mrb[4].mxu0  ;;  %v546_v13 = vpop.f32.mrb[4].mxu1 }
 0x42b   :  { %552 = vadd.xlane.f32.xlu1 %v442_v0  ;;  %v769_v14 = vpop.f32.mrb[5].mxu0  ;;  %v789_v15 = vpop.f32.mrb[5].mxu1 }
 0x42c   :  { %v445_v16 = vpop.f32.mrb[6].mxu0  ;;  %v549_v17 = vpop.f32.mrb[6].mxu1 }
 0x42d   :  { %v770_v18 = vpop.f32.mrb[7].mxu0  ;;  %v790_v19 = vpop.f32.mrb[7].mxu1 }
 0x42f   :  { %554 = vadd.xlane.f32.xlu1 %v546_v13 }
 0x4b8   :  { %v553_v20 = vpop.xlane.xlu1 %552 }
 0x4bc   :  { %v555_v22 = vpop.xlane.xlu1 %554 }
 0x4bd   :  { %v556_v24 = vadd.f32 %v555_v22, %v553_v20 }
 0x4bf   :  { %v557_v25 = vmul.f32 0.015625, %v556_v24 }
 0x4c1   :  { %v558_v26 = vsub.f32 %v442_v0, %v557_v25  ;;  %v560_v27 = vsub.f32 %v546_v13, %v557_v25 }
 0x4c3   :  { %v559_v28 = vmul.f32 %v1188_v48, %v558_v26  ;;  %v561_v30 = vmul.f32 %v1188_v48, %v560_v27 }
 0x4c5   :  { %v562_v29 = vmul.f32 %v559_v28, %v559_v28  ;;  %v565_v31 = vmul.f32 %v561_v30, %v561_v30 }
 0x4c7   :  { %563 = vadd.xlane.f32.xlu1 %v562_v29 }
 0x4cb   :  { %566 = vadd.xlane.f32.xlu1 %v565_v31 }
 0x4cc   :  { %939 = shalt.err (!%p936_p8)
}
 0x4cd   :  { %s940_s23 = scalar_lea.hbm %s1258_s7, 64 }
 0x4ce   :  { %p941_p9 = scmp.ne.s32.totalorder %s1258_s7, %s940_s23  ;;  %p944_p10 = scmp.lt.u32.totalorder %s940_s23, %s1258_s7 }
 0x4d0   :  { %p946_p11 = pnand %p944_p10, %p941_p9 }
 0x4d2   :  { %949 = shalt.err (!%p946_p11)
}
 0x4d3   :  { %607 = dma.vmem_to_hbm [thread:$0]  %s605_s17, 64, %s1258_s7, [#allocation4]   ;;  %v575_v37 = vsub.s32 4, %v1170_v21  ;;  %v588_v38 = vsub.s32 6, %v1170_v21  ;;  %v580_v39 = vsub.s32 5, %v1170_v21  ;;  %v593_v40 = vsub.s32 7, %v1170_v21 }
 0x4d4   :  { %s1014_s7 = smov [#allocation11]   ;;  %s1015_s29 = smov [#allocation13]  }
 0x4d5   :  { %v576_v41 = vrot.slane %v1176_v23, %v575_v37  ;;  %v589_v42 = vrot.slane %v1176_v23, %v588_v38  ;;  %v581_v45 = vrot.slane %v1176_v23, %v580_v39  ;;  %v594_v47 = vrot.slane %v1176_v23, %v593_v40  ;;  %s614_s28 = sshll.u32 %s1014_s7, 4  ;;  %s624_s30 = sshll.u32 %s1015_s29, 4  ;;  %s615_s28 = int_to_ptr.vmem [resolvable:$true] %s614_s28  ;;  %s625_s30 = int_to_ptr.vmem [resolvable:$true] %s624_s30 }
 0x4d6   :  { %s950_s11 = scalar_lea.vmem %s615_s28, 64  ;;  %p955_p13 = scmp.lt.s32.totalorder %s615_s28, %s615_s28 }
 0x4d7   :  { %p951_p12 = scmp.ne.s32.totalorder %s615_s28, %s950_s11  ;;  %p956_p0 = scmp.lt.s32.totalorder %s950_s11, %s950_s11 }
 0x4d9   :  { %p957_p1 = por %p956_p0, %p955_p13 }
 0x4db   :  { %p958_p2 = pnand %p957_p1, %p951_p12 }
 0x554   :  { %v564_v32 = vpop.xlane.xlu1 %563 }
 0x558   :  { %v567_v33 = vpop.xlane.xlu1 %566 }
 0x559   :  { %v568_v34 = vadd.f32 %v567_v33, %v564_v32 }
 0x55b   :  { %v569_v35 = vmul.f32 0.015625, %v568_v34 }
 0x55d   :  { %v570_v36 = vadd.f32 1e-05, %v569_v35 }
 0x55f   :  { %838 = vrsqrt.f32 %v570_v36 }
 0x569   :  { %v839_v43 = vpop.eup %838 }
 0x56a   :  { %v572_v44 = vmul.f32 %v839_v43, %v559_v28  ;;  %v585_v46 = vmul.f32 %v839_v43, %v561_v30 }
 0x56c   :  { %v577_v48 = vmul.f32 %v576_v41, %v572_v44  ;;  %v590_v49 = vmul.f32 %v589_v42, %v585_v46 }
 0x56e   :  { %v582_v50 = vadd.f32 %v581_v45, %v577_v48  ;;  %v595_v51 = vadd.f32 %v594_v47, %v590_v49 }
 0x570   :  { %v583_v21 = vpack.c.bf16 %v582_v50, %v582_v50  ;;  %v596_v52 = vpack.c.bf16 %v595_v51, %v595_v51 }
 0x572   :  { %584 = vst [vmem:[#allocation11] sm:$0xf] %v583_v21  ;;  %597 = vst [vmem:[#allocation13] sm:$0xf] %v596_v52 }
 0x573   :  { %961 = shalt.err (!%p958_p2)
}
 0x574   :  { %s962_s10 = scalar_lea.hbm %s1259_s8, 64 }
 0x575   :  { %p963_p3 = scmp.ne.s32.totalorder %s1259_s8, %s962_s10  ;;  %p966_p4 = scmp.lt.u32.totalorder %s962_s10, %s1259_s8 }
 0x577   :  { %p968_p5 = pnand %p966_p4, %p963_p3 }
 0x579   :  { %971 = shalt.err (!%p968_p5)
}
 0x57a   :  { %617 = dma.vmem_to_hbm [thread:$0]  %s615_s28, 64, %s1259_s8, [#allocation12]  }
 0x57b   :  { %s972_s22 = scalar_lea.vmem %s625_s30, 64  ;;  %p977_p7 = scmp.lt.s32.totalorder %s625_s30, %s625_s30 }
 0x57c   :  { %p973_p6 = scmp.ne.s32.totalorder %s625_s30, %s972_s22  ;;  %p978_p8 = scmp.lt.s32.totalorder %s972_s22, %s972_s22 }
 0x57e   :  { %p979_p9 = por %p978_p8, %p977_p7 }
 0x580   :  { %p980_p10 = pnand %p979_p9, %p973_p6 }
 0x582   :  { %983 = shalt.err (!%p980_p10)
}
 0x583   :  { %s984_s6 = scalar_lea.hbm %s1260_s9, 64 }
 0x584   :  { %p985_p11 = scmp.ne.s32.totalorder %s1260_s9, %s984_s6  ;;  %p988_p12 = scmp.lt.u32.totalorder %s984_s6, %s1260_s9 }
 0x586   :  { %p990_p13 = pnand %p988_p12, %p985_p11 }
 0x588   :  { %993 = shalt.err (!%p990_p13)
}
 0x589   :  { %627 = dma.vmem_to_hbm [thread:$0]  %s625_s30, 64, %s1260_s9, [#allocation12]  }
 0x58a   :  { %1000 = dma.done.wait [#allocation4], 64  }
 0x58b   :  { %1001 = vsyncadd [#allocation4], 4294967232 }
 0x58c   :  { %1002 = dma.done.wait [#allocation12], 128  }
 0x58d   :  { %1003 = vsyncadd [#allocation12], 4294967168 }
 0x58e   :  { %637 = vsyncpa [#allocation3], 1 }
 0x58f   :  { %638 = vsyncpa [#allocation6], 1 }
 0x590   :  { %639 = vsyncpa [#allocation9], 1 }
 0x591   :  { %640 = vsyncpa [#allocation4], 1 }
 0x592   :  { %641 = vsyncpa [#allocation12], 1 }

</bundles_post_ra>
